<compile_context>
chip_gen: v7x
topology: tpu7x:2x2x1
jax: 0.10.0
libtpu: 0.0.40
codegen_flags: <defaults>
</compile_context>

<pallas_src>
import jax
import jax.numpy as jnp
from jax import lax
from jax.experimental import pallas as pl
from jax.experimental.pallas import tpu as pltpu


# ------------------------------ Pallas kernel --------------------------------
def _bn_contrastive_kernel(x_ref, w_ref, bias_ref, o_ref):
    # x_ref:    (1, C, TN) bf16  image features (channels = sublanes, space = lanes)
    # w_ref:    (1, K, C)  bf16  folded weights: l2norm(w) * BN-scale * exp(logit_scale)
    # bias_ref: (1, K, 1)  f32   folded bias:    bias + l2norm(w) @ BN-shift
    # o_ref:    (1, K, TN) f32
    y = jnp.dot(w_ref[0], x_ref[0], preferred_element_type=jnp.float32)  # single MXU pass
    o_ref[0] = (y + bias_ref[0]).astype(o_ref.dtype)                     # lane-broadcast add


# -------------------------------- wrapper -------------------------------------
def bn_contrastive_head(x, w, gamma, beta, mean, var, logit_scale, bias,
                        *, eps=1e-5, tn=None):
    """x: (B, C, H, W) image features, w: (B, K, C) text features -> (B, K, H, W)."""
    B, C, H, W = x.shape
    K = w.shape[1]
    M = H * W

    # ---- fold eval-mode BN, exp(logit_scale) and F.normalize into the weights ----
    s = jnp.exp(logit_scale)
    inv_std = lax.rsqrt(var + eps)
    scale = gamma * inv_std * s                              # (C,)
    shift = (beta - mean * gamma * inv_std) * s              # (C,)

    ssq = jnp.sum(w * w, axis=-1, keepdims=True)             # (B, K, 1)
    wn = w * lax.rsqrt(jnp.maximum(ssq, 1e-24))              # F.normalize (eps=1e-12 on the norm)
    w_fold = (wn * scale[None, None, :]).astype(jnp.bfloat16)            # (B, K, C)
    bias_fold = (bias[0] + jnp.einsum('bkc,c->bk', wn, shift))           # (B, K)
    bias_fold = bias_fold.reshape(B, K, 1).astype(jnp.float32)

    x2 = x.reshape(B, C, M).astype(jnp.bfloat16)             # reshape + cast, no pad

    # ---- spatial tile: largest lane-dense 128-multiple within a v7x-safe budget ----
    if tn is None:
        budget = 8 * 1024 * 1024                             # bytes for double-buffered blocks
        per_col = 2 * (C * 2 + K * 4)                        # bf16 x-col + f32 out-col, x2 buffers
        tn_cap = max(128, (budget // per_col) // 128 * 128)
        tn = int(min(tn_cap, pl.cdiv(M, 128) * 128, 2048))
    # keep >=2 grid steps so both v7x TensorCores get work when B == 1
    if B * pl.cdiv(M, tn) < 2 and tn > 128:
        tn = max(128, pl.cdiv(pl.cdiv(M, 2), 128) * 128)
    n_tiles = pl.cdiv(M, tn)

    # ---- explicit scoped-VMEM limit (v5e default 16 MiB, v7x physical 64 MiB) ----
    x_blk = C * tn * 2
    w_blk = K * C * 2
    o_blk = K * tn * 4
    b_blk = K * 4
    vmem_need = 2 * (x_blk + w_blk + o_blk + b_blk) + (2 << 20)
    vmem_limit = int(min(max(vmem_need, 16 << 20), 56 << 20))

    out = pl.pallas_call(
        _bn_contrastive_kernel,
        out_shape=jax.ShapeDtypeStruct((B, K, M), jnp.float32),
        grid=(B, n_tiles),
        in_specs=[
            pl.BlockSpec((1, C, tn), lambda b, i: (b, 0, i)),
            pl.BlockSpec((1, K, C), lambda b, i: (b, 0, 0)),
            pl.BlockSpec((1, K, 1), lambda b, i: (b, 0, 0)),
        ],
        out_specs=pl.BlockSpec((1, K, tn), lambda b, i: (b, 0, i)),
        compiler_params=pltpu.CompilerParams(
            dimension_semantics=("parallel", "parallel"),
            vmem_limit_bytes=vmem_limit),
    )(x2, w_fold, bias_fold)

    return out.reshape(B, K, H, W)


# ---------------------------- pure-JAX reference ------------------------------
def ref_forward(x, w, gamma, beta, mean, var, logit_scale, bias, eps=1e-5):
    xn = (x - mean[None, :, None, None]) / jnp.sqrt(var[None, :, None, None] + eps)
    xn = xn * gamma[None, :, None, None] + beta[None, :, None, None]
    norm = jnp.maximum(jnp.sqrt(jnp.sum(w * w, axis=-1, keepdims=True)), 1e-12)
    wn = w / norm
    y = jnp.einsum('bchw,bkc->bkhw', xn, wn)
    return y * jnp.exp(logit_scale) + bias[0]


# ----------------------------------- main --------------------------------------
if __name__ == "__main__":
    key = jax.random.PRNGKey(0)
    ks = jax.random.split(key, 10)

    B, C, H, W, K = 2, 32, 16, 16, 16        # embed_dims=32, 16 text queries

    x = jax.random.normal(ks[0], (B, C, H, W), jnp.float32)
    w = jax.random.normal(ks[1], (B, K, C), jnp.float32)

    gamma = 1.0 + 0.1 * jax.random.normal(ks[2], (C,), jnp.float32)
    beta = 0.1 * jax.random.normal(ks[3], (C,), jnp.float32)
    mean = 0.1 * jax.random.normal(ks[4], (C,), jnp.float32)
    var = 0.5 + jax.random.uniform(ks[5], (C,), jnp.float32)
    logit_scale = jnp.float32(-1.0)
    bias = jnp.array([-10.0], jnp.float32)

    out = jax.jit(bn_contrastive_head)(x, w, gamma, beta, mean, var, logit_scale, bias)
    out = jax.block_until_ready(out)
    assert out.shape == (B, K, H, W), out.shape

    ref = jax.block_until_ready(
        jax.jit(ref_forward)(x, w, gamma, beta, mean, var, logit_scale, bias))
    max_err = float(jnp.max(jnp.abs(out - ref)))
    # bf16 operands (kernel) vs f32 reference; logits are O(10), slack covers rounding.
    assert max_err < 5e-2, f"mismatch vs reference: {max_err}"

    print("KERNEL_OK")
</pallas_src>

<mosaic_0001>
module attributes {stable_mosaic.version = 11 : i64} {
  func.func @_bn_contrastive_kernel(%arg0: i32, %arg1: i32, %arg2: memref<1x32x256xbf16, #tpu.memory_space<vmem>>, %arg3: memref<1x16x32xbf16, #tpu.memory_space<vmem>>, %arg4: memref<1x16x1xf32, #tpu.memory_space<vmem>>, %arg5: memref<1x16x256xf32, #tpu.memory_space<vmem>>) attributes {dimension_semantics = [#tpu.dimension_semantics<parallel>, #tpu.dimension_semantics<parallel>], iteration_bounds = array<i64: 2, 1>, scalar_prefetch = 0 : i64, scratch_operands = 0 : i64, tpu.core_type = #tpu.core_type<tc>, window_params = [{transform_indices = @transform_0, window_bounds = array<i64: 1, 32, 256>}, {transform_indices = @transform_1, window_bounds = array<i64: 1, 16, 32>}, {transform_indices = @transform_2, window_bounds = array<i64: 1, 16, 1>}, {transform_indices = @transform_3, window_bounds = array<i64: 1, 16, 256>}]} {
    %c0 = arith.constant 0 : index
    %c0_0 = arith.constant 0 : index
    %c0_1 = arith.constant 0 : index
    %0 = vector.load %arg3[%c0, %c0_0, %c0_1] : memref<1x16x32xbf16, #tpu.memory_space<vmem>>, vector<1x16x32xbf16>
    %1 = vector.shape_cast %0 : vector<1x16x32xbf16> to vector<16x32xbf16>
    %c0_2 = arith.constant 0 : index
    %c0_3 = arith.constant 0 : index
    %c0_4 = arith.constant 0 : index
    %2 = vector.load %arg2[%c0_2, %c0_3, %c0_4] : memref<1x32x256xbf16, #tpu.memory_space<vmem>>, vector<1x32x256xbf16>
    %3 = vector.shape_cast %2 : vector<1x32x256xbf16> to vector<32x256xbf16>
    %cst = arith.constant dense<0.000000e+00> : vector<16x256xf32>
    %4 = tpu.matmul %1, %3, %cst {dimension_numbers = #tpu.dot_dimension_numbers<[1], [0], [0], [1], [0, 0, 1, 1], [], []>} : vector<16x32xbf16>, vector<32x256xbf16>, vector<16x256xf32> -> vector<16x256xf32>
    %c0_5 = arith.constant 0 : index
    %c0_6 = arith.constant 0 : index
    %c0_7 = arith.constant 0 : index
    %5 = vector.load %arg4[%c0_5, %c0_6, %c0_7] : memref<1x16x1xf32, #tpu.memory_space<vmem>>, vector<1x16x1xf32>
    %6 = vector.shape_cast %5 : vector<1x16x1xf32> to vector<16x1xf32>
    %7 = vector.broadcast %6 : vector<16x1xf32> to vector<16x256xf32>
    %8 = arith.addf %4, %7 : vector<16x256xf32>
    %c0_8 = arith.constant 0 : index
    %c0_9 = arith.constant 0 : index
    %c0_10 = arith.constant 0 : index
    %9 = vector.load %arg5[%c0_8, %c0_9, %c0_10] : memref<1x16x256xf32, #tpu.memory_space<vmem>>, vector<1x16x256xf32>
    %10 = vector.shape_cast %9 : vector<1x16x256xf32> to vector<16x256xf32>
    %11 = vector.shape_cast %8 : vector<16x256xf32> to vector<1x16x256xf32>
    tpu.vector_store %arg5[%c0_8, %c0_9, %c0_10], %11 {strides = array<i32>} : memref<1x16x256xf32, #tpu.memory_space<vmem>>, vector<1x16x256xf32>,
    return
  }
  func.func @transform_0(%arg0: i32, %arg1: i32) -> (i32, i32, i32) {
    %c0_i32 = arith.constant 0 : i32
    %c0_i32_0 = arith.constant 0 : i32
    return %arg0, %c0_i32, %arg1 : i32, i32, i32
  }
  func.func @transform_1(%arg0: i32, %arg1: i32) -> (i32, i32, i32) {
    %c0_i32 = arith.constant 0 : i32
    %c0_i32_0 = arith.constant 0 : i32
    %c0_i32_1 = arith.constant 0 : i32
    return %arg0, %c0_i32, %c0_i32_0 : i32, i32, i32
  }
  func.func @transform_2(%arg0: i32, %arg1: i32) -> (i32, i32, i32) {
    %c0_i32 = arith.constant 0 : i32
    %c0_i32_0 = arith.constant 0 : i32
    %c0_i32_1 = arith.constant 0 : i32
    return %arg0, %c0_i32, %c0_i32_0 : i32, i32, i32
  }
  func.func @transform_3(%arg0: i32, %arg1: i32) -> (i32, i32, i32) {
    %c0_i32 = arith.constant 0 : i32
    %c0_i32_0 = arith.constant 0 : i32
    return %arg0, %c0_i32, %arg1 : i32, i32, i32
  }
}

</mosaic_0001>

<bundles_post_ra>
// kernel: bn_contrastive_head.1
= control target key start
LH: loop header
LB: loop body
LE: loop exit
PB: predicated region body
PF: predicated region fallthrough
CT: control target
= control target key end

     0   :  { %s559_s12 = smov 0   ;;  %s561_s13 = smov 0   ;;  %s598_s0 = inlined_call_operand.vmem [shape: bf16[2,32,256], index: 0, kind: input, shape index: {}]   ;;  %s599_s1 = inlined_call_operand.vmem [shape: bf16[2,16,32], index: 1, kind: input, shape index: {}]   ;;  %s600_s2 = inlined_call_operand.vmem [shape: f32[2,16,1], index: 2, kind: input, shape index: {}]   ;;  %s601_s3 = inlined_call_operand.vmem [shape: f32[2,16,256], index: 3, kind: output, shape index: {}]  }
   0x1   :  { %s563_s14 = smov 0  }
   0x2 LB: > { %s25_s15 = sadd.s32 1, %s532_s13  ;;  %p460_p0 = scmp.ge.s32.totalorder %s536_s14, 1  ;;  %s536_s14 = sphi %s563_s14, %s13_s14   ;;  %s532_s13 = sphi %s561_s13, %s603_s13   ;;  %s528_s12 = sphi %s559_s12, %s602_s12  }
   0x3   : > { %p27_p1 = scmp.ge.s32.totalorder %s25_s15, 2  ;;  %p178_p2 = scmp.lt.s32.totalorder %s536_s14, 3 }
   0x5   : > { %s605_s15 = smov (%p27_p1, %s25_s15), 0  ;;  %p179_p3 = pnand %p460_p0, %p178_p2 }
   0x6   : > { %p221_p4 = scmp.lt.s32.totalorder (!%p179_p3), %s528_s12, 1  ;;  %v538_v0 = vmov (!%p179_p3), 0   ;;  %vm294_vm0 = vcmask (!%p179_p3), 261120  }
   0x7   : > { %182 = sbr.rel (%p179_p3) target bundleno = 244 (0xf4), region = 32  ;;  %330 = vmatprep.mubr.bf16.mxu0 (!%p179_p3), %v538_v0  ;;  %506 = vset.pattern.permute.xlu0 (!%p179_p3), %v538_v0 }
   0xe   : > { %s607_s12 = smov (!%p221_p4, %s528_s12), 1 }
   0xf   : > { %s477_s16 = sshll.u32 %s607_s12, 5  ;;  %s478_s17 = sshll.u32 %s607_s12, 3 }
  0x10   : > { %s228_s20 = scalar_lea.vmem %s598_s0, %s477_s16  ;;  %s479_s21 = sshll.u32 %s607_s12, 4 }
  0x11   : > { %v507_v1 = vld [vmem:[%s228_s20 + $0x4] ss:$8 sps:$4 sm:$0xff]   ;;  %v509_v2 = vld [vmem:[%s228_s20] ss:$8 sps:$4 sm:$0xff]   ;;  %s234_s24 = scalar_lea.vmem %s599_s1, %s478_s17  ;;  %s239_s27 = scalar_lea.vmem %s600_s2, %s479_s21  ;;  %v510_v3 = vld [vmem:[%s228_s20 + $0x14] ss:$8 sps:$4 sm:$0xff]  }
  0x12   : > { %298 = vmatprep.subr.bf16.mxu0 %v507_v1  ;;  %v512_v4 = vld [vmem:[%s228_s20 + $0x10] ss:$8 sps:$4 sm:$0xff]   ;;  %v257_v5 = vld [vmem:[%s239_s27] sm:$0xff]  ;;  %v258_v6 = vld [vmem:[%s239_s27 + $0x8] sm:$0xff]  ;;  %s248_s30 = scalar_lea.vmem %s601_s3, %s477_s16 }
  0x13   : > { %299 = vmatpush1.bf16.msra.mxu0 %v509_v2  ;;  %261 = vperm.xlu0 %506, %v257_v5   ;;  %v513_v7 = vld [vmem:[%s234_s24] sm:$0xff]  }
  0x14   : > { %300 = vmatprep.subr.bf16.mxu0 %v510_v3 }
  0x17   : > { %301 = vmatpush1.bf16.msra.mxu0 %v512_v4  ;;  %266 = vperm.xlu0 %506, %v258_v6  }
  0x1a   : > { %474 = vmatmul.mubr.msk.bf16.vlgmr.msra.gmra.mrb[0].mxu0 %vm294_vm0, %v513_v7 }
  0x92   : > { %v262_v8 = vpop.permute.xlu0 %261 }
  0x96   : > { %v267_v12 = vpop.permute.xlu0 %266 }
  0xed   : > { %v332_v9 = vpop.f32.mrb[0].mxu0 }
  0xee   : > { %v333_v10 = vadd.f32 %v332_v9, %v262_v8  ;;  %v334_v11 = vpop.f32.mrb[1].mxu0 }
  0xef   : > { %v335_v13 = vadd.f32 %v334_v11, %v262_v8  ;;  %v336_v14 = vpop.f32.mrb[2].mxu0 }
  0xf0   : > { %341 = vst [vmem:[%s248_s30] sm:$0xff] %v333_v10  ;;  %v337_v15 = vadd.f32 %v336_v14, %v267_v12  ;;  %v338_v16 = vpop.f32.mrb[3].mxu0 }
  0xf1   : > { %342 = vst [vmem:[%s248_s30 + $0x8] sm:$0xff] %v335_v13  ;;  %v339_v17 = vadd.f32 %v338_v16, %v267_v12 }
  0xf2   : > { %343 = vst [vmem:[%s248_s30 + $0x10] sm:$0xff] %v337_v15 }
  0xf3   : > { %344 = vst [vmem:[%s248_s30 + $0x18] sm:$0xff] %v339_v17 }
  0xf4 PF: > { %s13_s14 = sadd.s32 1, %s536_s14   ;;  %s602_s12 = smov %s532_s13 }
  0xf5   : > { %p10_p5 = scmp.ge.s32.totalorder %s13_s14, 4   ;;  %s603_s13 = smov %s605_s15 }
  0xf7   :  { %12 = sbr.rel (!%p10_p5) target bundleno = 2 (0x2), region = 68 }

</bundles_post_ra>
